<compile_context>
chip_gen: v7x
topology: tpu7x:2x2x1
jax: 0.10.0
libtpu: 0.0.40
codegen_flags: <defaults>
</compile_context>

<pallas_src>
import jax
import jax.numpy as jnp
from jax.experimental import pallas as pl
from jax.experimental.pallas import tpu as pltpu

EPS = 1e-5                       # torch.nn.LayerNorm default
_MIN_GRID_STEPS = 8              # >= 4 steps per core on v7x's two TensorCores
_MAX_IN_BUFFER = 4 * 1024 * 1024 # cap per pipelined input buffer (keeps DMA depth)


def _vmem_budgets():
    """(vmem_limit_bytes, per-block byte budget) derived from the chip generation."""
    cap = 64 * 1024 * 1024  # conservative floor (v7x per-core VMEM)
    try:
        info = pltpu.get_tpu_info()
        reported = getattr(info, "vmem_capacity_bytes", None)
        if reported:
            cap = int(reported)
    except Exception:
        pass
    # 64 MiB scoped limit on 128-MiB parts (v5e/v6e), 48 MiB on 64-MiB v7x.
    vmem_limit = min((cap * 3) // 4, 64 * 1024 * 1024)
    return vmem_limit, vmem_limit // 2


def _merge_ln_reduce_kernel(x_ref, we_ref, wo_ref, ws_ref, b_ref, o_ref):
    """Fused 2x2 patch-merge + LayerNorm(4C) + Linear(4C -> OUT, bias=False).

    x_ref : (TM, 2, W2, 2C) even/odd-H row pairs; last dim = [even-W px | odd-W px]
    we_ref: (2C, OUT)       gamma-folded reduction weight, even-H half
    wo_ref: (2C, OUT)       gamma-folded reduction weight, odd-H half
    ws_ref: (1, OUT)        column sums of the gamma-folded weight (mean term)
    b_ref : (1, OUT)        beta @ W^T
    o_ref : (TM*W2, OUT)
    """
    tm, _, w2, c2 = x_ref.shape
    rows = tm * w2

    # The wrapper guarantees W2 % 8 == 0, so collapsing (TM, W2) into the sublane
    # dimension is a layout-preserving (free) reshape.
    xe = x_ref[:, 0, :, :].reshape(rows, c2)    # [x0 | x2]
    xo = x_ref[:, 1, :, :].reshape(rows, c2)    # [x1 | x3]

    # LayerNorm statistics over the full 4C channels via independent partial
    # reductions (sums of each half can co-issue on the XLUs).
    # TODO(synk): E[x^2]-mean^2 can lose precision for offset-heavy activations;
    # a two-pass variant would need an extra sweep over the slab.
    xe32 = xe.astype(jnp.float32)
    xo32 = xo.astype(jnp.float32)
    inv_n = 1.0 / (2 * c2)
    s1 = jnp.sum(xe32, axis=-1, keepdims=True) + jnp.sum(xo32, axis=-1, keepdims=True)
    s2 = (jnp.sum(xe32 * xe32, axis=-1, keepdims=True)
          + jnp.sum(xo32 * xo32, axis=-1, keepdims=True))
    mean = s1 * inv_n
    var = jnp.maximum(s2 * inv_n - mean * mean, 0.0)
    inv = jax.lax.rsqrt(var + EPS)

    # MXU consumes the raw activations (bf16 operands, f32 accumulation); the
    # LayerNorm affine becomes a cheap O(rows*OUT) post-matmul fixup.
    cdt = we_ref.dtype
    raw = (jnp.dot(xe.astype(cdt), we_ref[...], preferred_element_type=jnp.float32)
           + jnp.dot(xo.astype(cdt), wo_ref[...], preferred_element_type=jnp.float32))
    # TODO(synk): on v5e with large C and 2C % 128 != 0, concatenating the two halves
    # into one (rows, 4C) bf16 scratch and issuing a single K=4C dot would avoid
    # partially filled MXU pushes.
    y = inv * raw - (inv * mean) * ws_ref[...] + b_ref[...]
    # TODO(synk): when OUT % 128 != 0, folding k rows into lanes (lane-dense
    # out_spec) would remove the masked partial vst stores.
    o_ref[...] = y.astype(o_ref.dtype)


def patch_merging_2d(x, ln_gamma, ln_beta, red_weight, *,
                     compute_dtype=jnp.bfloat16):
    """PatchMerging2D forward (channel_first=False).

    x          : (B, H, W, C) channel-last
    ln_gamma   : (4C,) LayerNorm weight
    ln_beta    : (4C,) LayerNorm bias
    red_weight : (OUT, 4C) nn.Linear weight (out_features, in_features), no bias
    returns    : (B, ceil(H/2), ceil(W/2), OUT)
    """
    B, H, W, C = x.shape
    C2, C4 = 2 * C, 4 * C
    OUT = red_weight.shape[0]
    out_dtype = x.dtype

    # Output spatial size (matches F.pad(x, (0, 0, 0, W % 2, 0, H % 2)) + 2x2 merge).
    H2 = (H + 1) // 2
    W2 = (W + 1) // 2
    # Pad H to even and W up to a multiple of 16 so the fused path always applies
    # (W2p % 8 == 0 keeps the in-kernel sublane collapse free).  Padded pixels are
    # all-zero rows whose outputs are sliced off below; the W%2 / H%2 part of the
    # padding reproduces PyTorch's F.pad semantics exactly.
    Hp = 2 * H2
    Wp = -(-W // 16) * 16
    W2p = Wp // 2
    if Hp != H or Wp != W:
        x = jnp.pad(x, ((0, 0), (0, Hp - H), (0, Wp - W), (0, 0)))

    M = B * H2            # number of (batch, output-row) groups
    Np = M * W2p          # number of output pixels computed by the kernel

    # Fold LayerNorm gamma into the reduction weight; beta becomes an output bias;
    # the mean term becomes a per-row scale of the weight column sums.
    wf = red_weight.astype(jnp.float32)                       # (OUT, 4C)
    wg = wf * ln_gamma.astype(jnp.float32)[None, :]           # gamma folded
    bias = (wf @ ln_beta.astype(jnp.float32)).reshape(1, OUT)
    wsum = jnp.sum(wg, axis=1).reshape(1, OUT)
    # Kernel channel order: even-H half = [x0 | x2], odd-H half = [x1 | x3].
    perm = jnp.concatenate([jnp.arange(0, C), jnp.arange(2 * C, 3 * C),
                            jnp.arange(C, 2 * C), jnp.arange(3 * C, 4 * C)])
    wgp = wg[:, perm]
    we = wgp[:, :C2].T.astype(compute_dtype)                  # (2C, OUT) even-H half
    wo = wgp[:, C2:].T.astype(compute_dtype)                  # (2C, OUT) odd-H half

    # Free (contiguous) reshape: (B, Hp, Wp, C) -> (M, 2, W2p, 2C) with
    #   [:,0,:,0:C]=x0  [:,0,:,C:2C]=x2  [:,1,:,0:C]=x1  [:,1,:,C:2C]=x3
    xv = x.reshape(M, 2, W2p, C2)

    # ---- tile sizing --------------------------------------------------------
    x_size = jnp.dtype(x.dtype).itemsize
    o_size = jnp.dtype(out_dtype).itemsize
    cd_size = jnp.dtype(compute_dtype).itemsize
    vmem_limit, block_budget = _vmem_budgets()

    in_row = 2 * W2p * C2 * x_size                       # input bytes per row group
    out_row = W2p * OUT * o_size
    tmp_row = 2 * W2p * C2 * (4 + cd_size) + W2p * OUT * 4   # f32 stats + bf16 + accum
    w_bytes = 2 * C2 * OUT * cd_size + 2 * OUT * 4
    row_bytes = 2 * in_row + 2 * out_row + tmp_row

    budget = max(1 << 20, block_budget - 2 * w_bytes)
    tm = max(1, min(M, budget // max(row_bytes, 1)))
    tm = max(1, min(tm, _MAX_IN_BUFFER // max(in_row, 1)))   # keep DMA buffers small
    if M >= _MIN_GRID_STEPS:                                  # keep the pipeline deep
        tm = max(1, min(tm, M // _MIN_GRID_STEPS))
    grid = (-(-M // tm),)

    cost = pl.CostEstimate(
        flops=int(2 * Np * C4 * OUT + 8 * Np * C4),
        transcendentals=int(Np),
        bytes_accessed=int(M * 2 * W2p * C2 * x_size + 2 * C2 * OUT * cd_size
                           + 2 * OUT * 4 + Np * OUT * o_size))
    cparams = pltpu.CompilerParams(dimension_semantics=("parallel",),
                                   vmem_limit_bytes=int(vmem_limit))

    def _run(single_buffer_consts):
        mode = pl.Buffered(1) if (single_buffer_consts and hasattr(pl, "Buffered")) else None

        def const_spec(shape):
            imap = lambda i: (0,) * len(shape)
            if mode is None:
                return pl.BlockSpec(shape, imap)
            return pl.BlockSpec(shape, imap, pipeline_mode=mode)

        return pl.pallas_call(
            _merge_ln_reduce_kernel,
            out_shape=jax.ShapeDtypeStruct((Np, OUT), out_dtype),
            grid_spec=pltpu.PrefetchScalarGridSpec(
                num_scalar_prefetch=0,
                grid=grid,
                in_specs=[
                    pl.BlockSpec((tm, 2, W2p, C2), lambda i: (i, 0, 0, 0)),
                    const_spec((C2, OUT)),
                    const_spec((C2, OUT)),
                    const_spec((1, OUT)),
                    const_spec((1, OUT)),
                ],
                out_specs=pl.BlockSpec((tm * W2p, OUT), lambda i: (i, 0)),
            ),
            compiler_params=cparams,
            cost_estimate=cost,
        )(xv, we, wo, wsum, bias)

    try:
        out_flat = _run(True)
    except Exception:
        # Older Pallas without single-buffer pipeline_mode support.
        out_flat = _run(False)

    out = out_flat.reshape(B, H2, W2p, OUT)
    if W2p != W2:
        out = out[:, :, :W2, :]     # drop alignment-only padded output columns
    return out


def _reference(x, ln_gamma, ln_beta, red_weight):
    """Pure-JAX f32 reference mirroring the PyTorch forward exactly."""
    B, H, W, C = x.shape
    pad_h, pad_w = H % 2, W % 2
    if pad_h or pad_w:
        x = jnp.pad(x, ((0, 0), (0, pad_h), (0, pad_w), (0, 0)))
    x0 = x[:, 0::2, 0::2, :]
    x1 = x[:, 1::2, 0::2, :]
    x2 = x[:, 0::2, 1::2, :]
    x3 = x[:, 1::2, 1::2, :]
    xm = jnp.concatenate([x0, x1, x2, x3], axis=-1).astype(jnp.float32)
    mean = jnp.mean(xm, axis=-1, keepdims=True)
    var = jnp.mean((xm - mean) ** 2, axis=-1, keepdims=True)
    xn = (xm - mean) * jax.lax.rsqrt(var + EPS)
    xn = xn * ln_gamma + ln_beta
    return jnp.einsum("bhwc,oc->bhwo", xn, red_weight.astype(jnp.float32))


if __name__ == "__main__":
    key = jax.random.PRNGKey(0)
    k_x, k_g, k_b, k_w = jax.random.split(key, 4)

    # --- main check: even spatial size (W2 already a multiple of 8) ----------
    B, C, H, W = 2, 4, 16, 16
    OUT, C4 = 2 * C, 4 * C
    x = jax.random.normal(k_x, (B, H, W, C), dtype=jnp.float32)
    ln_gamma = 1.0 + 0.1 * jax.random.normal(k_g, (C4,), dtype=jnp.float32)
    ln_beta = 0.1 * jax.random.normal(k_b, (C4,), dtype=jnp.float32)
    red_weight = jax.random.normal(k_w, (OUT, C4), dtype=jnp.float32) / jnp.sqrt(C4)

    out = jax.block_until_ready(patch_merging_2d(x, ln_gamma, ln_beta, red_weight))
    ref = _reference(x, ln_gamma, ln_beta, red_weight)
    assert out.shape == (B, H // 2, W // 2, OUT), out.shape
    err = float(jnp.max(jnp.abs(out - ref)))
    assert err < 7.5e-2, err   # bf16 MXU operands (raw activations) vs f32 reference

    # --- secondary check: odd spatial size -> pad + output-column slice ------
    kb_x, kb_g, kb_b, kb_w = jax.random.split(jax.random.PRNGKey(1), 4)
    Bb, Cb, Hb, Wb = 1, 8, 9, 9
    OUTb, C4b = 2 * Cb, 4 * Cb
    xb = jax.random.normal(kb_x, (Bb, Hb, Wb, Cb), dtype=jnp.float32)
    gb = 1.0 + 0.1 * jax.random.normal(kb_g, (C4b,), dtype=jnp.float32)
    bb = 0.1 * jax.random.normal(kb_b, (C4b,), dtype=jnp.float32)
    wb = jax.random.normal(kb_w, (OUTb, C4b), dtype=jnp.float32) / jnp.sqrt(C4b)

    outb = jax.block_until_ready(patch_merging_2d(xb, gb, bb, wb))
    refb = _reference(xb, gb, bb, wb)
    assert outb.shape == (Bb, (Hb + 1) // 2, (Wb + 1) // 2, OUTb), outb.shape
    errb = float(jnp.max(jnp.abs(outb - refb)))
    assert errb < 7.5e-2, errb

    print("KERNEL_OK")
</pallas_src>

<mosaic_0001>
module attributes {stable_mosaic.version = 11 : i64} {
  func.func @_merge_ln_reduce_kernel(%arg0: i32, %arg1: memref<2x2x8x8xf32, #tpu.memory_space<vmem>>, %arg2: memref<8x8xbf16, #tpu.memory_space<vmem>>, %arg3: memref<8x8xbf16, #tpu.memory_space<vmem>>, %arg4: memref<1x8xf32, #tpu.memory_space<vmem>>, %arg5: memref<1x8xf32, #tpu.memory_space<vmem>>, %arg6: memref<16x8xf32, #tpu.memory_space<vmem>>) attributes {dimension_semantics = [#tpu.dimension_semantics<parallel>], iteration_bounds = array<i64: 8>, scalar_prefetch = 0 : i64, scratch_operands = 0 : i64, tpu.core_type = #tpu.core_type<tc>, window_params = [{transform_indices = @transform_0, window_bounds = array<i64: 2, 2, 8, 8>}, {pipeline_mode = #tpu.pipeline_mode<synchronous>, transform_indices = @transform_1, window_bounds = array<i64: 8, 8>}, {pipeline_mode = #tpu.pipeline_mode<synchronous>, transform_indices = @transform_2, window_bounds = array<i64: 8, 8>}, {pipeline_mode = #tpu.pipeline_mode<synchronous>, transform_indices = @transform_3, window_bounds = array<i64: 1, 8>}, {pipeline_mode = #tpu.pipeline_mode<synchronous>, transform_indices = @transform_4, window_bounds = array<i64: 1, 8>}, {transform_indices = @transform_5, window_bounds = array<i64: 16, 8>}]} {
    %c0 = arith.constant 0 : index
    %c0_0 = arith.constant 0 : index
    %c0_1 = arith.constant 0 : index
    %c0_2 = arith.constant 0 : index
    %0 = vector.load %arg1[%c0, %c0_0, %c0_1, %c0_2] : memref<2x2x8x8xf32, #tpu.memory_space<vmem>>, vector<2x1x8x8xf32>
    %1 = vector.shape_cast %0 : vector<2x1x8x8xf32> to vector<2x8x8xf32>
    %2 = vector.shape_cast %1 : vector<2x8x8xf32> to vector<16x8xf32>
    %c0_3 = arith.constant 0 : index
    %c1 = arith.constant 1 : index
    %c0_4 = arith.constant 0 : index
    %c0_5 = arith.constant 0 : index
    %3 = vector.load %arg1[%c0_3, %c1, %c0_4, %c0_5] : memref<2x2x8x8xf32, #tpu.memory_space<vmem>>, vector<2x1x8x8xf32>
    %4 = vector.shape_cast %3 : vector<2x1x8x8xf32> to vector<2x8x8xf32>
    %5 = vector.shape_cast %4 : vector<2x8x8xf32> to vector<16x8xf32>
    %cst = arith.constant dense<0.000000e+00> : vector<16xf32>
    %6 = vector.multi_reduction <add>, %2, %cst [1] : vector<16x8xf32> to vector<16xf32>
    %7 = vector.shape_cast %6 : vector<16xf32> to vector<16x1xf32>
    %cst_6 = arith.constant dense<0.000000e+00> : vector<16xf32>
    %8 = vector.multi_reduction <add>, %5, %cst_6 [1] : vector<16x8xf32> to vector<16xf32>
    %9 = vector.shape_cast %8 : vector<16xf32> to vector<16x1xf32>
    %10 = arith.addf %7, %9 : vector<16x1xf32>
    %11 = arith.mulf %2, %2 : vector<16x8xf32>
    %cst_7 = arith.constant dense<0.000000e+00> : vector<16xf32>
    %12 = vector.multi_reduction <add>, %11, %cst_7 [1] : vector<16x8xf32> to vector<16xf32>
    %13 = vector.shape_cast %12 : vector<16xf32> to vector<16x1xf32>
    %14 = arith.mulf %5, %5 : vector<16x8xf32>
    %cst_8 = arith.constant dense<0.000000e+00> : vector<16xf32>
    %15 = vector.multi_reduction <add>, %14, %cst_8 [1] : vector<16x8xf32> to vector<16xf32>
    %16 = vector.shape_cast %15 : vector<16xf32> to vector<16x1xf32>
    %17 = arith.addf %13, %16 : vector<16x1xf32>
    %cst_9 = arith.constant 6.250000e-02 : f32
    %18 = vector.broadcast %cst_9 : f32 to vector<16x1xf32>
    %19 = arith.mulf %10, %18 : vector<16x1xf32>
    %cst_10 = arith.constant 6.250000e-02 : f32
    %20 = vector.broadcast %cst_10 : f32 to vector<16x1xf32>
    %21 = arith.mulf %17, %20 : vector<16x1xf32>
    %22 = arith.mulf %19, %19 : vector<16x1xf32>
    %23 = arith.subf %21, %22 : vector<16x1xf32>
    %cst_11 = arith.constant 0.000000e+00 : f32
    %24 = vector.broadcast %cst_11 : f32 to vector<16x1xf32>
    %25 = arith.maximumf %23, %24 : vector<16x1xf32>
    %cst_12 = arith.constant 9.99999974E-6 : f32
    %26 = vector.broadcast %cst_12 : f32 to vector<16x1xf32>
    %27 = arith.addf %25, %26 : vector<16x1xf32>
    %28 = math.rsqrt %27 : vector<16x1xf32>
    %29 = arith.truncf %2 : vector<16x8xf32> to vector<16x8xbf16>
    %c0_13 = arith.constant 0 : index
    %c0_14 = arith.constant 0 : index
    %30 = vector.load %arg2[%c0_13, %c0_14] : memref<8x8xbf16, #tpu.memory_space<vmem>>, vector<8x8xbf16>
    %cst_15 = arith.constant dense<0.000000e+00> : vector<16x8xf32>
    %31 = tpu.matmul %29, %30, %cst_15 {dimension_numbers = #tpu.dot_dimension_numbers<[1], [0], [0], [1], [0, 0, 1, 1], [], []>} : vector<16x8xbf16>, vector<8x8xbf16>, vector<16x8xf32> -> vector<16x8xf32>
    %32 = arith.truncf %5 : vector<16x8xf32> to vector<16x8xbf16>
    %c0_16 = arith.constant 0 : index
    %c0_17 = arith.constant 0 : index
    %33 = vector.load %arg3[%c0_16, %c0_17] : memref<8x8xbf16, #tpu.memory_space<vmem>>, vector<8x8xbf16>
    %cst_18 = arith.constant dense<0.000000e+00> : vector<16x8xf32>
    %34 = tpu.matmul %32, %33, %cst_18 {dimension_numbers = #tpu.dot_dimension_numbers<[1], [0], [0], [1], [0, 0, 1, 1], [], []>} : vector<16x8xbf16>, vector<8x8xbf16>, vector<16x8xf32> -> vector<16x8xf32>
    %35 = arith.addf %31, %34 : vector<16x8xf32>
    %36 = vector.broadcast %28 : vector<16x1xf32> to vector<16x8xf32>
    %37 = arith.mulf %36, %35 : vector<16x8xf32>
    %38 = arith.mulf %28, %19 : vector<16x1xf32>
    %c0_19 = arith.constant 0 : index
    %c0_20 = arith.constant 0 : index
    %39 = vector.load %arg4[%c0_19, %c0_20] : memref<1x8xf32, #tpu.memory_space<vmem>>, vector<1x8xf32>
    %40 = vector.broadcast %38 : vector<16x1xf32> to vector<16x8xf32>
    %41 = vector.broadcast %39 : vector<1x8xf32> to vector<16x8xf32>
    %42 = arith.mulf %40, %41 : vector<16x8xf32>
    %43 = arith.subf %37, %42 : vector<16x8xf32>
    %c0_21 = arith.constant 0 : index
    %c0_22 = arith.constant 0 : index
    %44 = vector.load %arg5[%c0_21, %c0_22] : memref<1x8xf32, #tpu.memory_space<vmem>>, vector<1x8xf32>
    %45 = vector.broadcast %44 : vector<1x8xf32> to vector<16x8xf32>
    %46 = arith.addf %43, %45 : vector<16x8xf32>
    %c0_23 = arith.constant 0 : index
    %c0_24 = arith.constant 0 : index
    %47 = vector.load %arg6[%c0_23, %c0_24] : memref<16x8xf32, #tpu.memory_space<vmem>>, vector<16x8xf32>
    tpu.vector_store %arg6[%c0_23, %c0_24], %46 {strides = array<i32>} : memref<16x8xf32, #tpu.memory_space<vmem>>, vector<16x8xf32>,
    return
  }
  func.func @transform_0(%arg0: i32) -> (i32, i32, i32, i32) {
    %c0_i32 = arith.constant 0 : i32
    %c0_i32_0 = arith.constant 0 : i32
    %c0_i32_1 = arith.constant 0 : i32
    %c0_i32_2 = arith.constant 0 : i32
    return %arg0, %c0_i32, %c0_i32_0, %c0_i32_1 : i32, i32, i32, i32
  }
  func.func @transform_1(%arg0: i32) -> (i32, i32) {
    %c0_i32 = arith.constant 0 : i32
    %c0_i32_0 = arith.constant 0 : i32
    %c0_i32_1 = arith.constant 0 : i32
    return %c0_i32, %c0_i32_0 : i32, i32
  }
  func.func @transform_2(%arg0: i32) -> (i32, i32) {
    %c0_i32 = arith.constant 0 : i32
    %c0_i32_0 = arith.constant 0 : i32
    %c0_i32_1 = arith.constant 0 : i32
    return %c0_i32, %c0_i32_0 : i32, i32
  }
  func.func @transform_3(%arg0: i32) -> (i32, i32) {
    %c0_i32 = arith.constant 0 : i32
    %c0_i32_0 = arith.constant 0 : i32
    %c0_i32_1 = arith.constant 0 : i32
    return %c0_i32, %c0_i32_0 : i32, i32
  }
  func.func @transform_4(%arg0: i32) -> (i32, i32) {
    %c0_i32 = arith.constant 0 : i32
    %c0_i32_0 = arith.constant 0 : i32
    %c0_i32_1 = arith.constant 0 : i32
    return %c0_i32, %c0_i32_0 : i32, i32
  }
  func.func @transform_5(%arg0: i32) -> (i32, i32) {
    %c0_i32 = arith.constant 0 : i32
    %c0_i32_0 = arith.constant 0 : i32
    return %arg0, %c0_i32 : i32, i32
  }
}

module attributes {stable_mosaic.version = 11 : i64} {
  func.func @_merge_ln_reduce_kernel(%arg0: i32, %arg1: memref<2x2x8x8xf32, #tpu.memory_space<vmem>>, %arg2: memref<8x8xbf16, #tpu.memory_space<vmem>>, %arg3: memref<8x8xbf16, #tpu.memory_space<vmem>>, %arg4: memref<1x8xf32, #tpu.memory_space<vmem>>, %arg5: memref<1x8xf32, #tpu.memory_space<vmem>>, %arg6: memref<16x8xf32, #tpu.memory_space<vmem>>) attributes {dimension_semantics = [#tpu.dimension_semantics<parallel>], iteration_bounds = array<i64: 8>, scalar_prefetch = 0 : i64, scratch_operands = 0 : i64, tpu.core_type = #tpu.core_type<tc>, window_params = [{transform_indices = @transform_0, window_bounds = array<i64: 2, 2, 8, 8>}, {pipeline_mode = #tpu.pipeline_mode<synchronous>, transform_indices = @transform_1, window_bounds = array<i64: 8, 8>}, {pipeline_mode = #tpu.pipeline_mode<synchronous>, transform_indices = @transform_2, window_bounds = array<i64: 8, 8>}, {pipeline_mode = #tpu.pipeline_mode<synchronous>, transform_indices = @transform_3, window_bounds = array<i64: 1, 8>}, {pipeline_mode = #tpu.pipeline_mode<synchronous>, transform_indices = @transform_4, window_bounds = array<i64: 1, 8>}, {transform_indices = @transform_5, window_bounds = array<i64: 16, 8>}]} {
    %c0 = arith.constant 0 : index
    %c0_0 = arith.constant 0 : index
    %c0_1 = arith.constant 0 : index
    %c0_2 = arith.constant 0 : index
    %0 = vector.load %arg1[%c0, %c0_0, %c0_1, %c0_2] : memref<2x2x8x8xf32, #tpu.memory_space<vmem>>, vector<2x1x8x8xf32>
    %1 = vector.shape_cast %0 : vector<2x1x8x8xf32> to vector<2x8x8xf32>
    %2 = vector.shape_cast %1 : vector<2x8x8xf32> to vector<16x8xf32>
    %c0_3 = arith.constant 0 : index
    %c1 = arith.constant 1 : index
    %c0_4 = arith.constant 0 : index
    %c0_5 = arith.constant 0 : index
    %3 = vector.load %arg1[%c0_3, %c1, %c0_4, %c0_5] : memref<2x2x8x8xf32, #tpu.memory_space<vmem>>, vector<2x1x8x8xf32>
    %4 = vector.shape_cast %3 : vector<2x1x8x8xf32> to vector<2x8x8xf32>
    %5 = vector.shape_cast %4 : vector<2x8x8xf32> to vector<16x8xf32>
    %cst = arith.constant dense<0.000000e+00> : vector<16xf32>
    %6 = vector.multi_reduction <add>, %2, %cst [1] : vector<16x8xf32> to vector<16xf32>
    %7 = vector.shape_cast %6 : vector<16xf32> to vector<16x1xf32>
    %cst_6 = arith.constant dense<0.000000e+00> : vector<16xf32>
    %8 = vector.multi_reduction <add>, %5, %cst_6 [1] : vector<16x8xf32> to vector<16xf32>
    %9 = vector.shape_cast %8 : vector<16xf32> to vector<16x1xf32>
    %10 = arith.addf %7, %9 : vector<16x1xf32>
    %11 = arith.mulf %2, %2 : vector<16x8xf32>
    %cst_7 = arith.constant dense<0.000000e+00> : vector<16xf32>
    %12 = vector.multi_reduction <add>, %11, %cst_7 [1] : vector<16x8xf32> to vector<16xf32>
    %13 = vector.shape_cast %12 : vector<16xf32> to vector<16x1xf32>
    %14 = arith.mulf %5, %5 : vector<16x8xf32>
    %cst_8 = arith.constant dense<0.000000e+00> : vector<16xf32>
    %15 = vector.multi_reduction <add>, %14, %cst_8 [1] : vector<16x8xf32> to vector<16xf32>
    %16 = vector.shape_cast %15 : vector<16xf32> to vector<16x1xf32>
    %17 = arith.addf %13, %16 : vector<16x1xf32>
    %cst_9 = arith.constant 6.250000e-02 : f32
    %18 = vector.broadcast %cst_9 : f32 to vector<16x1xf32>
    %19 = arith.mulf %10, %18 : vector<16x1xf32>
    %cst_10 = arith.constant 6.250000e-02 : f32
    %20 = vector.broadcast %cst_10 : f32 to vector<16x1xf32>
    %21 = arith.mulf %17, %20 : vector<16x1xf32>
    %22 = arith.mulf %19, %19 : vector<16x1xf32>
    %23 = arith.subf %21, %22 : vector<16x1xf32>
    %cst_11 = arith.constant 0.000000e+00 : f32
    %24 = vector.broadcast %cst_11 : f32 to vector<16x1xf32>
    %25 = arith.maximumf %23, %24 : vector<16x1xf32>
    %cst_12 = arith.constant 9.99999974E-6 : f32
    %26 = vector.broadcast %cst_12 : f32 to vector<16x1xf32>
    %27 = arith.addf %25, %26 : vector<16x1xf32>
    %28 = math.rsqrt %27 : vector<16x1xf32>
    %29 = arith.truncf %2 : vector<16x8xf32> to vector<16x8xbf16>
    %c0_13 = arith.constant 0 : index
    %c0_14 = arith.constant 0 : index
    %30 = vector.load %arg2[%c0_13, %c0_14] : memref<8x8xbf16, #tpu.memory_space<vmem>>, vector<8x8xbf16>
    %cst_15 = arith.constant dense<0.000000e+00> : vector<16x8xf32>
    %31 = tpu.matmul %29, %30, %cst_15 {dimension_numbers = #tpu.dot_dimension_numbers<[1], [0], [0], [1], [0, 0, 1, 1], [], []>} : vector<16x8xbf16>, vector<8x8xbf16>, vector<16x8xf32> -> vector<16x8xf32>
    %32 = arith.truncf %5 : vector<16x8xf32> to vector<16x8xbf16>
    %c0_16 = arith.constant 0 : index
    %c0_17 = arith.constant 0 : index
    %33 = vector.load %arg3[%c0_16, %c0_17] : memref<8x8xbf16, #tpu.memory_space<vmem>>, vector<8x8xbf16>
    %cst_18 = arith.constant dense<0.000000e+00> : vector<16x8xf32>
    %34 = tpu.matmul %32, %33, %cst_18 {dimension_numbers = #tpu.dot_dimension_numbers<[1], [0], [0], [1], [0, 0, 1, 1], [], []>} : vector<16x8xbf16>, vector<8x8xbf16>, vector<16x8xf32> -> vector<16x8xf32>
    %35 = arith.addf %31, %34 : vector<16x8xf32>
    %36 = vector.broadcast %28 : vector<16x1xf32> to vector<16x8xf32>
    %37 = arith.mulf %36, %35 : vector<16x8xf32>
    %38 = arith.mulf %28, %19 : vector<16x1xf32>
    %c0_19 = arith.constant 0 : index
    %c0_20 = arith.constant 0 : index
    %39 = vector.load %arg4[%c0_19, %c0_20] : memref<1x8xf32, #tpu.memory_space<vmem>>, vector<1x8xf32>
    %40 = vector.broadcast %38 : vector<16x1xf32> to vector<16x8xf32>
    %41 = vector.broadcast %39 : vector<1x8xf32> to vector<16x8xf32>
    %42 = arith.mulf %40, %41 : vector<16x8xf32>
    %43 = arith.subf %37, %42 : vector<16x8xf32>
    %c0_21 = arith.constant 0 : index
    %c0_22 = arith.constant 0 : index
    %44 = vector.load %arg5[%c0_21, %c0_22] : memref<1x8xf32, #tpu.memory_space<vmem>>, vector<1x8xf32>
    %45 = vector.broadcast %44 : vector<1x8xf32> to vector<16x8xf32>
    %46 = arith.addf %43, %45 : vector<16x8xf32>
    %c0_23 = arith.constant 0 : index
    %c0_24 = arith.constant 0 : index
    %47 = vector.load %arg6[%c0_23, %c0_24] : memref<16x8xf32, #tpu.memory_space<vmem>>, vector<16x8xf32>
    tpu.vector_store %arg6[%c0_23, %c0_24], %46 {strides = array<i32>} : memref<16x8xf32, #tpu.memory_space<vmem>>, vector<16x8xf32>,
    return
  }
  func.func @transform_0(%arg0: i32) -> (i32, i32, i32, i32) {
    %c0_i32 = arith.constant 0 : i32
    %c0_i32_0 = arith.constant 0 : i32
    %c0_i32_1 = arith.constant 0 : i32
    %c0_i32_2 = arith.constant 0 : i32
    return %arg0, %c0_i32, %c0_i32_0, %c0_i32_1 : i32, i32, i32, i32
  }
  func.func @transform_1(%arg0: i32) -> (i32, i32) {
    %c0_i32 = arith.constant 0 : i32
    %c0_i32_0 = arith.constant 0 : i32
    %c0_i32_1 = arith.constant 0 : i32
    return %c0_i32, %c0_i32_0 : i32, i32
  }
  func.func @transform_2(%arg0: i32) -> (i32, i32) {
    %c0_i32 = arith.constant 0 : i32
    %c0_i32_0 = arith.constant 0 : i32
    %c0_i32_1 = arith.constant 0 : i32
    return %c0_i32, %c0_i32_0 : i32, i32
  }
  func.func @transform_3(%arg0: i32) -> (i32, i32) {
    %c0_i32 = arith.constant 0 : i32
    %c0_i32_0 = arith.constant 0 : i32
    %c0_i32_1 = arith.constant 0 : i32
    return %c0_i32, %c0_i32_0 : i32, i32
  }
  func.func @transform_4(%arg0: i32) -> (i32, i32) {
    %c0_i32 = arith.constant 0 : i32
    %c0_i32_0 = arith.constant 0 : i32
    %c0_i32_1 = arith.constant 0 : i32
    return %c0_i32, %c0_i32_0 : i32, i32
  }
  func.func @transform_5(%arg0: i32) -> (i32, i32) {
    %c0_i32 = arith.constant 0 : i32
    %c0_i32_0 = arith.constant 0 : i32
    return %arg0, %c0_i32 : i32, i32
  }
}

</mosaic_0001>

<bundles_post_ra>
// kernel: tpu_custom_call.1
= control target key start
LH: loop header
LB: loop body
LE: loop exit
PB: predicated region body
PF: predicated region fallthrough
CT: control target
= control target key end

     0   :  { %s556_s18 = smov 0   ;;  %s601_s0 = inlined_call_operand.vmem [shape: f32[16,2,8,8], index: 0, kind: input, shape index: {}]   ;;  %s602_s1 = inlined_call_operand.vmem [shape: bf16[8,8], index: 1, kind: input, shape index: {}]   ;;  %s603_s2 = inlined_call_operand.vmem [shape: bf16[8,8], index: 2, kind: input, shape index: {}]   ;;  %s604_s3 = inlined_call_operand.vmem [shape: f32[1,8], index: 3, kind: input, shape index: {}]   ;;  %s605_s4 = inlined_call_operand.vmem [shape: f32[1,8], index: 4, kind: input, shape index: {}]   ;;  %s606_s5 = inlined_call_operand.vmem [shape: f32[128,8], index: 5, kind: output, shape index: {}]  }
   0x1 LB: > { %s465_s19 = sadd.s32 4294967295, %s522_s18   ;;  %p469_p0 = scmp.ge.s32.totalorder %s522_s18, 1  ;;  %s522_s18 = sphi %s556_s18, %s15_s18  }
   0x2   : > { %p189_p1 = scmp.lt.s32.totalorder %s522_s18, 9 }
   0x4   : > { %p190_p2 = pnand %p469_p0, %p189_p1 }
   0x5   : > { %v287_v0 = vld [vmem:[%s603_s2] sm:$0xf] (!%p190_p2)  ;;  %vm291_vm0 = vcmask (!%p190_p2), 1043456   ;;  %v524_v2 = vmov (!%p190_p2), 0.0   ;;  %s470_s24 = sshll.u32 (!%p190_p2), %s465_s19, 1  ;;  %vm525_vm1 = vmmov (!%p190_p2), 0  }
   0x6   : > { %193 = sbr.rel (%p190_p2) target bundleno = 243 (0xf3), region = 40  ;;  %v285_v1 = vld [vmem:[%s602_s1] sm:$0xf] (!%p190_p2)  ;;  %488 = vmatprep.subr.bf16.mxu1 (!%p190_p2), %v524_v2  ;;  %494 = vmatprep.subr.bf16.mxu0 (!%p190_p2), %v524_v2  ;;  %v293_v3 = vsel (!%p190_p2), %vm291_vm0, %v287_v0, 0  ;;  %p219_p3 = scmp.lt.s32.totalorder (!%p190_p2), %s470_s24, 15  ;;  %vm237_vm2 = vcmask (!%p190_p2), 64512  }
   0x7   : > { %v340_v4 = vsel (!%p190_p2), %vm291_vm0, %v285_v1, 0  ;;  %489 = vmatpush3.bf16.msra.mxu1 (!%p190_p2), %v293_v3  ;;  %490 = vmatprep.mubr.msk.bf16.mxu1 (!%p190_p2), %vm525_vm1, %v524_v2  ;;  %v479_v52 = vld [vmem:[%s604_s3] ss:$0 sm:$0xff] (!%p190_p2) }
   0x8   : > { %495 = vmatpush3.bf16.msra.mxu0 (!%p190_p2), %v340_v4  ;;  %496 = vmatprep.mubr.msk.bf16.mxu0 (!%p190_p2), %vm525_vm1, %v524_v2  ;;  %v480_v0 = vld [vmem:[%s605_s4] ss:$0 sm:$0xff] (!%p190_p2) }
   0xd   : > { %s608_s24 = smov (!%p219_p3, %s470_s24), 15 }
   0xe   : > { %s483_s25 = sshll.u32 %s608_s24, 4  ;;  %s474_s6 = sshll.u32 %s608_s24, 3 }
   0xf   : > { %s223_s28 = scalar_lea.vmem %s601_s0, %s483_s25  ;;  %s229_s11 = scalar_lea.vmem %s606_s5, %s474_s6 }
  0x10   : > { %v475_v5 = vld [vmem:[%s223_s28 + $0x8] sm:$0xff]  ;;  %v476_v6 = vld [vmem:[%s223_s28 + $0x18] sm:$0xff]  ;;  %v232_v7 = vld [vmem:[%s223_s28] sm:$0xff] }
  0x11   : > { %v286_v8 = vpack.c.bf16 %v476_v6, %v475_v5  ;;  %v233_v9 = vld [vmem:[%s223_s28 + $0x10] sm:$0xff]  ;;  %v238_v10 = vsel %vm237_vm2, %v232_v7, 0.0  ;;  %v244_v11 = vsel %vm237_vm2, %v475_v5, 0.0  ;;  %v247_v14 = vsel %vm237_vm2, %v476_v6, 0.0 }
  0x12   : > { %v284_v12 = vpack.c.bf16 %v233_v9, %v232_v7  ;;  %239 = vadd.xlane.f32.xlu0 %v238_v10  ;;  %245 = vadd.xlane.f32.xlu1 %v244_v11  ;;  %v241_v13 = vsel %vm237_vm2, %v233_v9, 0.0  ;;  %v252_v15 = vmul.f32 %v232_v7, %v232_v7  ;;  %v253_v16 = vmul.f32 %v233_v9, %v233_v9 }
  0x13   : > { %491 = vmatmul.mubr.msk.bf16.vlgmr.msra.gmra.mrb[0].mxu1 %vm237_vm2, %v286_v8  ;;  %v260_v19 = vmul.f32 %v475_v5, %v475_v5  ;;  %v261_v20 = vmul.f32 %v476_v6, %v476_v6 }
  0x14   : > { %497 = vmatmul.mubr.msk.bf16.vlgmr.msra.gmra.mrb[0].mxu0 %vm237_vm2, %v284_v12  ;;  %v254_v17 = vsel %vm237_vm2, %v252_v15, 0.0  ;;  %v257_v18 = vsel %vm237_vm2, %v253_v16, 0.0 }
  0x15   : > { %v262_v21 = vsel %vm237_vm2, %v260_v19, 0.0  ;;  %v265_v22 = vsel %vm237_vm2, %v261_v20, 0.0 }
  0x16   : > { %242 = vadd.xlane.f32.xlu0 %v241_v13  ;;  %248 = vadd.xlane.f32.xlu1 %v247_v14 }
  0x1a   : > { %255 = vadd.xlane.f32.xlu0 %v254_v17  ;;  %258 = vadd.xlane.f32.xlu1 %v257_v18 }
  0x1e   : > { %263 = vadd.xlane.f32.xlu0 %v262_v21  ;;  %266 = vadd.xlane.f32.xlu1 %v265_v22 }
  0x9f   : > { %v240_v23 = vpop.xlane.xlu0 %239  ;;  %v246_v24 = vpop.xlane.xlu1 %245 }
  0xa0   : > { %v250_v29 = vadd.f32 %v246_v24, %v240_v23 }
  0xa2   : > { %v270_v33 = vmul.f32 0.0625, %v250_v29 }
  0xa3   : > { %v243_v25 = vpop.xlane.xlu0 %242  ;;  %v249_v26 = vpop.xlane.xlu1 %248 }
  0xa4   : > { %v251_v31 = vadd.f32 %v249_v26, %v243_v25  ;;  %v274_v37 = vmul.f32 %v270_v33, %v270_v33 }
  0xa6   : > { %v271_v35 = vmul.f32 0.0625, %v251_v31 }
  0xa7   : > { %v256_v27 = vpop.xlane.xlu0 %255  ;;  %v259_v28 = vpop.xlane.xlu1 %258 }
  0xa8   : > { %v275_v39 = vmul.f32 %v271_v35, %v271_v35 }
  0xab   : > { %v264_v30 = vpop.xlane.xlu0 %263  ;;  %v267_v32 = vpop.xlane.xlu1 %266 }
  0xac   : > { %v268_v34 = vadd.f32 %v264_v30, %v256_v27  ;;  %v269_v36 = vadd.f32 %v267_v32, %v259_v28 }
  0xae   : > { %v272_v38 = vmul.f32 0.0625, %v268_v34  ;;  %v273_v40 = vmul.f32 0.0625, %v269_v36 }
  0xb0   : > { %v276_v41 = vsub.f32 %v272_v38, %v274_v37  ;;  %v277_v42 = vsub.f32 %v273_v40, %v275_v39 }
  0xb2   : > { %v278_v43 = vmax.f32 %v276_v41, 0.0  ;;  %v279_v44 = vmax.f32 %v277_v42, 0.0 }
  0xb4   : > { %v280_v45 = vadd.f32 1e-05, %v278_v43  ;;  %v281_v46 = vadd.f32 1e-05, %v279_v44 }
  0xb6   : > { %512 = vrsqrt.f32 %v280_v45 }
  0xb7   : > { %514 = vrsqrt.f32 %v281_v46 }
  0xc0   : > { %v513_v47 = vpop.eup %512 }
  0xc1   : > { %v515_v48 = vpop.eup %514  ;;  %v385_v50 = vmul.f32 %v513_v47, %v270_v33 }
  0xc2   : > { %v386_v57 = vmul.f32 %v515_v48, %v271_v35 }
  0xc3   : > { %v394_v61 = vmul.f32 %v479_v52, %v385_v50 }
  0xc4   : > { %v395_v3 = vmul.f32 %v479_v52, %v386_v57 }
  0xe6   : > { %v329_v49 = vpop.f32.mrb[0].mxu1 }
  0xe7   : > { %v376_v51 = vpop.f32.mrb[0].mxu0  ;;  %v492_v53 = vpop.f32.mrb[1].mxu1 }
  0xe8   : > { %v377_v54 = vadd.f32 %v376_v51, %v329_v49  ;;  %v498_v55 = vpop.f32.mrb[1].mxu0  ;;  %v332_v56 = vpop.f32.mrb[2].mxu1 }
  0xe9   : > { %v379_v58 = vpop.f32.mrb[2].mxu0  ;;  %v493_v59 = vpop.f32.mrb[3].mxu1 }
  0xea   : > { %v383_v60 = vmul.f32 %v513_v47, %v377_v54  ;;  %v380_v62 = vadd.f32 %v379_v58, %v332_v56  ;;  %v499_v63 = vpop.f32.mrb[3].mxu0 }
  0xec   : > { %v396_v1 = vsub.f32 %v383_v60, %v394_v61  ;;  %v384_v2 = vmul.f32 %v515_v48, %v380_v62 }
  0xee   : > { %v405_v4 = vadd.f32 %v480_v0, %v396_v1  ;;  %v397_v5 = vsub.f32 %v384_v2, %v395_v3 }
  0xf0   : > { %407 = vst.msk [vmem:[%s229_s11] sm:$0xff] %vm237_vm2, %v405_v4  ;;  %v406_v6 = vadd.f32 %v480_v0, %v397_v5 }
  0xf2   : > { %408 = vst.msk [vmem:[%s229_s11 + $0x8] sm:$0xff] %vm237_vm2, %v406_v6 }
  0xf3 PF: > { %s15_s18 = sadd.s32 1, %s522_s18  }
  0xf4   : > { %p12_p4 = scmp.ge.s32.totalorder %s15_s18, 10  }
  0xf6   :  { %14 = sbr.rel (!%p12_p4) target bundleno = 1 (0x1), region = 71 }

// kernel: tpu_custom_call.1
= control target key start
LH: loop header
LB: loop body
LE: loop exit
PB: predicated region body
PF: predicated region fallthrough
CT: control target
= control target key end

     0   :  { %s556_s18 = smov 0   ;;  %s601_s0 = inlined_call_operand.vmem [shape: f32[16,2,8,8], index: 0, kind: input, shape index: {}]   ;;  %s602_s1 = inlined_call_operand.vmem [shape: bf16[8,8], index: 1, kind: input, shape index: {}]   ;;  %s603_s2 = inlined_call_operand.vmem [shape: bf16[8,8], index: 2, kind: input, shape index: {}]   ;;  %s604_s3 = inlined_call_operand.vmem [shape: f32[1,8], index: 3, kind: input, shape index: {}]   ;;  %s605_s4 = inlined_call_operand.vmem [shape: f32[1,8], index: 4, kind: input, shape index: {}]   ;;  %s606_s5 = inlined_call_operand.vmem [shape: f32[128,8], index: 5, kind: output, shape index: {}]  }
   0x1 LB: > { %s465_s19 = sadd.s32 4294967295, %s522_s18   ;;  %p469_p0 = scmp.ge.s32.totalorder %s522_s18, 1  ;;  %s522_s18 = sphi %s556_s18, %s15_s18  }
   0x2   : > { %p189_p1 = scmp.lt.s32.totalorder %s522_s18, 9 }
   0x4   : > { %p190_p2 = pnand %p469_p0, %p189_p1 }
   0x5   : > { %v287_v0 = vld [vmem:[%s603_s2] sm:$0xf] (!%p190_p2)  ;;  %vm291_vm0 = vcmask (!%p190_p2), 1043456   ;;  %v524_v2 = vmov (!%p190_p2), 0.0   ;;  %s470_s24 = sshll.u32 (!%p190_p2), %s465_s19, 1  ;;  %vm525_vm1 = vmmov (!%p190_p2), 0  }
   0x6   : > { %193 = sbr.rel (%p190_p2) target bundleno = 243 (0xf3), region = 40  ;;  %v285_v1 = vld [vmem:[%s602_s1] sm:$0xf] (!%p190_p2)  ;;  %488 = vmatprep.subr.bf16.mxu1 (!%p190_p2), %v524_v2  ;;  %494 = vmatprep.subr.bf16.mxu0 (!%p190_p2), %v524_v2  ;;  %v293_v3 = vsel (!%p190_p2), %vm291_vm0, %v287_v0, 0  ;;  %p219_p3 = scmp.lt.s32.totalorder (!%p190_p2), %s470_s24, 15  ;;  %vm237_vm2 = vcmask (!%p190_p2), 64512  }
   0x7   : > { %v340_v4 = vsel (!%p190_p2), %vm291_vm0, %v285_v1, 0  ;;  %489 = vmatpush3.bf16.msra.mxu1 (!%p190_p2), %v293_v3  ;;  %490 = vmatprep.mubr.msk.bf16.mxu1 (!%p190_p2), %vm525_vm1, %v524_v2  ;;  %v479_v52 = vld [vmem:[%s604_s3] ss:$0 sm:$0xff] (!%p190_p2) }
   0x8   : > { %495 = vmatpush3.bf16.msra.mxu0 (!%p190_p2), %v340_v4  ;;  %496 = vmatprep.mubr.msk.bf16.mxu0 (!%p190_p2), %vm525_vm1, %v524_v2  ;;  %v480_v0 = vld [vmem:[%s605_s4] ss:$0 sm:$0xff] (!%p190_p2) }
   0xd   : > { %s608_s24 = smov (!%p219_p3, %s470_s24), 15 }
   0xe   : > { %s483_s25 = sshll.u32 %s608_s24, 4  ;;  %s474_s6 = sshll.u32 %s608_s24, 3 }
   0xf   : > { %s223_s28 = scalar_lea.vmem %s601_s0, %s483_s25  ;;  %s229_s11 = scalar_lea.vmem %s606_s5, %s474_s6 }
  0x10   : > { %v475_v5 = vld [vmem:[%s223_s28 + $0x8] sm:$0xff]  ;;  %v476_v6 = vld [vmem:[%s223_s28 + $0x18] sm:$0xff]  ;;  %v232_v7 = vld [vmem:[%s223_s28] sm:$0xff] }
  0x11   : > { %v286_v8 = vpack.c.bf16 %v476_v6, %v475_v5  ;;  %v233_v9 = vld [vmem:[%s223_s28 + $0x10] sm:$0xff]  ;;  %v238_v10 = vsel %vm237_vm2, %v232_v7, 0.0  ;;  %v244_v11 = vsel %vm237_vm2, %v475_v5, 0.0  ;;  %v247_v14 = vsel %vm237_vm2, %v476_v6, 0.0 }
  0x12   : > { %v284_v12 = vpack.c.bf16 %v233_v9, %v232_v7  ;;  %239 = vadd.xlane.f32.xlu0 %v238_v10  ;;  %245 = vadd.xlane.f32.xlu1 %v244_v11  ;;  %v241_v13 = vsel %vm237_vm2, %v233_v9, 0.0  ;;  %v252_v15 = vmul.f32 %v232_v7, %v232_v7  ;;  %v253_v16 = vmul.f32 %v233_v9, %v233_v9 }
  0x13   : > { %491 = vmatmul.mubr.msk.bf16.vlgmr.msra.gmra.mrb[0].mxu1 %vm237_vm2, %v286_v8  ;;  %v260_v19 = vmul.f32 %v475_v5, %v475_v5  ;;  %v261_v20 = vmul.f32 %v476_v6, %v476_v6 }
  0x14   : > { %497 = vmatmul.mubr.msk.bf16.vlgmr.msra.gmra.mrb[0].mxu0 %vm237_vm2, %v284_v12  ;;  %v254_v17 = vsel %vm237_vm2, %v252_v15, 0.0  ;;  %v257_v18 = vsel %vm237_vm2, %v253_v16, 0.0 }
  0x15   : > { %v262_v21 = vsel %vm237_vm2, %v260_v19, 0.0  ;;  %v265_v22 = vsel %vm237_vm2, %v261_v20, 0.0 }
  0x16   : > { %242 = vadd.xlane.f32.xlu0 %v241_v13  ;;  %248 = vadd.xlane.f32.xlu1 %v247_v14 }
  0x1a   : > { %255 = vadd.xlane.f32.xlu0 %v254_v17  ;;  %258 = vadd.xlane.f32.xlu1 %v257_v18 }
  0x1e   : > { %263 = vadd.xlane.f32.xlu0 %v262_v21  ;;  %266 = vadd.xlane.f32.xlu1 %v265_v22 }
  0x9f   : > { %v240_v23 = vpop.xlane.xlu0 %239  ;;  %v246_v24 = vpop.xlane.xlu1 %245 }
  0xa0   : > { %v250_v29 = vadd.f32 %v246_v24, %v240_v23 }
  0xa2   : > { %v270_v33 = vmul.f32 0.0625, %v250_v29 }
  0xa3   : > { %v243_v25 = vpop.xlane.xlu0 %242  ;;  %v249_v26 = vpop.xlane.xlu1 %248 }
  0xa4   : > { %v251_v31 = vadd.f32 %v249_v26, %v243_v25  ;;  %v274_v37 = vmul.f32 %v270_v33, %v270_v33 }
  0xa6   : > { %v271_v35 = vmul.f32 0.0625, %v251_v31 }
  0xa7   : > { %v256_v27 = vpop.xlane.xlu0 %255  ;;  %v259_v28 = vpop.xlane.xlu1 %258 }
  0xa8   : > { %v275_v39 = vmul.f32 %v271_v35, %v271_v35 }
  0xab   : > { %v264_v30 = vpop.xlane.xlu0 %263  ;;  %v267_v32 = vpop.xlane.xlu1 %266 }
  0xac   : > { %v268_v34 = vadd.f32 %v264_v30, %v256_v27  ;;  %v269_v36 = vadd.f32 %v267_v32, %v259_v28 }
  0xae   : > { %v272_v38 = vmul.f32 0.0625, %v268_v34  ;;  %v273_v40 = vmul.f32 0.0625, %v269_v36 }
  0xb0   : > { %v276_v41 = vsub.f32 %v272_v38, %v274_v37  ;;  %v277_v42 = vsub.f32 %v273_v40, %v275_v39 }
  0xb2   : > { %v278_v43 = vmax.f32 %v276_v41, 0.0  ;;  %v279_v44 = vmax.f32 %v277_v42, 0.0 }
  0xb4   : > { %v280_v45 = vadd.f32 1e-05, %v278_v43  ;;  %v281_v46 = vadd.f32 1e-05, %v279_v44 }
  0xb6   : > { %512 = vrsqrt.f32 %v280_v45 }
  0xb7   : > { %514 = vrsqrt.f32 %v281_v46 }
  0xc0   : > { %v513_v47 = vpop.eup %512 }
  0xc1   : > { %v515_v48 = vpop.eup %514  ;;  %v385_v50 = vmul.f32 %v513_v47, %v270_v33 }
  0xc2   : > { %v386_v57 = vmul.f32 %v515_v48, %v271_v35 }
  0xc3   : > { %v394_v61 = vmul.f32 %v479_v52, %v385_v50 }
  0xc4   : > { %v395_v3 = vmul.f32 %v479_v52, %v386_v57 }
  0xe6   : > { %v329_v49 = vpop.f32.mrb[0].mxu1 }
  0xe7   : > { %v376_v51 = vpop.f32.mrb[0].mxu0  ;;  %v492_v53 = vpop.f32.mrb[1].mxu1 }
  0xe8   : > { %v377_v54 = vadd.f32 %v376_v51, %v329_v49  ;;  %v498_v55 = vpop.f32.mrb[1].mxu0  ;;  %v332_v56 = vpop.f32.mrb[2].mxu1 }
  0xe9   : > { %v379_v58 = vpop.f32.mrb[2].mxu0  ;;  %v493_v59 = vpop.f32.mrb[3].mxu1 }
  0xea   : > { %v383_v60 = vmul.f32 %v513_v47, %v377_v54  ;;  %v380_v62 = vadd.f32 %v379_v58, %v332_v56  ;;  %v499_v63 = vpop.f32.mrb[3].mxu0 }
  0xec   : > { %v396_v1 = vsub.f32 %v383_v60, %v394_v61  ;;  %v384_v2 = vmul.f32 %v515_v48, %v380_v62 }
  0xee   : > { %v405_v4 = vadd.f32 %v480_v0, %v396_v1  ;;  %v397_v5 = vsub.f32 %v384_v2, %v395_v3 }
  0xf0   : > { %407 = vst.msk [vmem:[%s229_s11] sm:$0xff] %vm237_vm2, %v405_v4  ;;  %v406_v6 = vadd.f32 %v480_v0, %v397_v5 }
  0xf2   : > { %408 = vst.msk [vmem:[%s229_s11 + $0x8] sm:$0xff] %vm237_vm2, %v406_v6 }
  0xf3 PF: > { %s15_s18 = sadd.s32 1, %s522_s18  }
  0xf4   : > { %p12_p4 = scmp.ge.s32.totalorder %s15_s18, 10  }
  0xf6   :  { %14 = sbr.rel (!%p12_p4) target bundleno = 1 (0x1), region = 71 }

</bundles_post_ra>
